<compile_context>
chip_gen: v6e
topology: v6e:2x2x1
jax: 0.10.0
libtpu: 0.0.40
codegen_flags: <defaults>
</compile_context>

<pallas_src>
import jax
import jax.numpy as jnp
from jax.experimental import pallas as pl
from jax.experimental.pallas import tpu as pltpu

BN_EPS = 1e-5


def weight_predictor_kernel(x_ref, w_ref, b_ref, gamma_ref, beta_ref, o_ref):
    x = x_ref[...]          # (N, 2)
    w = w_ref[...]          # (2, tD)

    # Linear(2, D): K=2 -> two VPU FMAs; skip the MXU entirely.
    y = x[:, 0:1] * w[0:1, :] + x[:, 1:2] * w[1:2, :] + b_ref[...]

    # BatchNorm1d, training-mode statistics (biased variance over the batch).
    # Stats are per-feature, so D-tiles are independent; N must never be tiled.
    mean = jnp.mean(y, axis=0, keepdims=True)
    centered = y - mean
    var = jnp.mean(centered * centered, axis=0, keepdims=True)
    scale = gamma_ref[...] * jax.lax.rsqrt(var + BN_EPS)   # gamma folded into rsqrt
    y_bn = centered * scale + beta_ref[...]

    # ReLU
    o_ref[...] = jnp.maximum(y_bn, 0.0).astype(o_ref.dtype)


def _round_up(v, m):
    return ((v + m - 1) // m) * m


def weight_predictor(x, w, b, gamma, beta, *, block_d=512):
    """x: (N, 2) f32, w: (2, D) f32, b/gamma/beta: (1, D) f32 -> (N, D) f32."""
    n, k = x.shape
    assert k == 2, "WeightPredictor's Linear has in_features=2"
    d = w.shape[1]

    # Lane-dense features: pad D to a multiple of 128 (and of the D-tile when
    # tiling). Padded columns produce zeros (gamma/beta padded with 0) and are
    # sliced off below, so semantics are unchanged.
    d128 = _round_up(d, 128)
    td = min(block_d, d128)
    d_pad = _round_up(d128, td)
    if d_pad != d:
        pad = ((0, 0), (0, d_pad - d))
        w = jnp.pad(w, pad)
        b = jnp.pad(b, pad)
        gamma = jnp.pad(gamma, pad)
        beta = jnp.pad(beta, pad)

    out_shape = jax.ShapeDtypeStruct((n, d_pad), jnp.float32)

    if d_pad == td:
        # Single block: no grid at all -> no per-step grid-loop overhead.
        out = pl.pallas_call(
            weight_predictor_kernel,
            out_shape=out_shape,
            in_specs=[pl.BlockSpec(memory_space=pltpu.MemorySpace.VMEM)] * 5,
            out_specs=pl.BlockSpec(memory_space=pltpu.MemorySpace.VMEM),
        )(x, w, b, gamma, beta)
    else:
        # Tile ONLY over D (batch-norm stats need the full batch per tile).
        out = pl.pallas_call(
            weight_predictor_kernel,
            out_shape=out_shape,
            grid_spec=pltpu.PrefetchScalarGridSpec(
                num_scalar_prefetch=0,
                grid=(d_pad // td,),
                in_specs=[
                    pl.BlockSpec((n, 2), lambda j: (0, 0)),
                    pl.BlockSpec((2, td), lambda j: (0, j)),
                    pl.BlockSpec((1, td), lambda j: (0, j)),
                    pl.BlockSpec((1, td), lambda j: (0, j)),
                    pl.BlockSpec((1, td), lambda j: (0, j)),
                ],
                out_specs=pl.BlockSpec((n, td), lambda j: (0, j)),
            ),
            compiler_params=pltpu.CompilerParams(
                dimension_semantics=("parallel",)),
        )(x, w, b, gamma, beta)

    return out if d_pad == d else out[:, :d]


def _reference(x, w, b, gamma, beta):
    y = x @ w + b
    m = jnp.mean(y, axis=0, keepdims=True)
    v = jnp.mean((y - m) ** 2, axis=0, keepdims=True)
    return jnp.maximum((y - m) * jax.lax.rsqrt(v + BN_EPS) * gamma + beta, 0.0)


if __name__ == "__main__":
    # TODO(synk): PyTorch training-mode BatchNorm also updates running_mean/var
    # buffers as a side effect; only the forward output is produced here.

    # --- small shapes implied by the module: batch N=8, in_features=2, D=32 ---
    N, IN_DIM, D = 8, 2, 32
    key = jax.random.PRNGKey(0)
    kx, kw, kb = jax.random.split(key, 3)

    bound = 1.0 / (IN_DIM ** 0.5)          # nn.Linear default init range
    w = jax.random.uniform(kw, (IN_DIM, D), jnp.float32, -bound, bound)
    b = jax.random.uniform(kb, (1, D), jnp.float32, -bound, bound)
    gamma = jnp.ones((1, D), jnp.float32)   # BatchNorm1d default affine init
    beta = jnp.zeros((1, D), jnp.float32)
    x = jax.random.normal(kx, (N, IN_DIM), jnp.float32)

    out = weight_predictor(x, w, b, gamma, beta)
    jax.block_until_ready(out)
    ref = _reference(x, w, b, gamma, beta)
    assert out.shape == (N, D)
    assert jnp.allclose(out, ref, atol=1e-4, rtol=1e-4)

    # --- also exercise the D-tiled ("parallel" over D) path once ---
    D2 = 640
    kw2, kb2, kx2 = jax.random.split(jax.random.PRNGKey(1), 3)
    w2 = jax.random.uniform(kw2, (IN_DIM, D2), jnp.float32, -bound, bound)
    b2 = jax.random.uniform(kb2, (1, D2), jnp.float32, -bound, bound)
    gamma2 = jnp.ones((1, D2), jnp.float32)
    beta2 = jnp.zeros((1, D2), jnp.float32)
    x2 = jax.random.normal(kx2, (N, IN_DIM), jnp.float32)

    out2 = weight_predictor(x2, w2, b2, gamma2, beta2, block_d=512)
    jax.block_until_ready(out2)
    ref2 = _reference(x2, w2, b2, gamma2, beta2)
    assert out2.shape == (N, D2)
    assert jnp.allclose(out2, ref2, atol=1e-4, rtol=1e-4)

    print("KERNEL_OK")
</pallas_src>

<mosaic_0001>
module attributes {stable_mosaic.version = 11 : i64} {
  func.func @weight_predictor_kernel(%arg0: memref<8x2xf32, #tpu.memory_space<vmem>>, %arg1: memref<2x128xf32, #tpu.memory_space<vmem>>, %arg2: memref<1x128xf32, #tpu.memory_space<vmem>>, %arg3: memref<1x128xf32, #tpu.memory_space<vmem>>, %arg4: memref<1x128xf32, #tpu.memory_space<vmem>>, %arg5: memref<8x128xf32, #tpu.memory_space<vmem>>) attributes {dimension_semantics = [], scalar_prefetch = 0 : i64, scratch_operands = 0 : i64, tpu.core_type = #tpu.core_type<tc>} {
    %c0 = arith.constant 0 : index
    %c0_0 = arith.constant 0 : index
    %0 = vector.load %arg0[%c0, %c0_0] : memref<8x2xf32, #tpu.memory_space<vmem>>, vector<8x2xf32>
    %c0_1 = arith.constant 0 : index
    %c0_2 = arith.constant 0 : index
    %1 = vector.load %arg1[%c0_1, %c0_2] : memref<2x128xf32, #tpu.memory_space<vmem>>, vector<2x128xf32>
    %2 = vector.extract_strided_slice %0 {offsets = [0, 0], sizes = [8, 1], strides = [1, 1]} : vector<8x2xf32> to vector<8x1xf32>
    %3 = vector.extract_strided_slice %1 {offsets = [0, 0], sizes = [1, 128], strides = [1, 1]} : vector<2x128xf32> to vector<1x128xf32>
    %4 = vector.broadcast %2 : vector<8x1xf32> to vector<8x128xf32>
    %5 = vector.broadcast %3 : vector<1x128xf32> to vector<8x128xf32>
    %6 = arith.mulf %4, %5 : vector<8x128xf32>
    %7 = vector.extract_strided_slice %0 {offsets = [0, 1], sizes = [8, 1], strides = [1, 1]} : vector<8x2xf32> to vector<8x1xf32>
    %8 = vector.extract_strided_slice %1 {offsets = [1, 0], sizes = [1, 128], strides = [1, 1]} : vector<2x128xf32> to vector<1x128xf32>
    %9 = vector.broadcast %7 : vector<8x1xf32> to vector<8x128xf32>
    %10 = vector.broadcast %8 : vector<1x128xf32> to vector<8x128xf32>
    %11 = arith.mulf %9, %10 : vector<8x128xf32>
    %12 = arith.addf %6, %11 : vector<8x128xf32>
    %c0_3 = arith.constant 0 : index
    %c0_4 = arith.constant 0 : index
    %13 = vector.load %arg2[%c0_3, %c0_4] : memref<1x128xf32, #tpu.memory_space<vmem>>, vector<1x128xf32>
    %14 = vector.broadcast %13 : vector<1x128xf32> to vector<8x128xf32>
    %15 = arith.addf %12, %14 : vector<8x128xf32>
    %cst = arith.constant dense<0.000000e+00> : vector<128xf32>
    %16 = vector.multi_reduction <add>, %15, %cst [0] : vector<8x128xf32> to vector<128xf32>
    %17 = vector.shape_cast %16 : vector<128xf32> to vector<1x128xf32>
    %cst_5 = arith.constant 8.000000e+00 : f32
    %18 = vector.broadcast %cst_5 : f32 to vector<1x128xf32>
    %19 = arith.divf %17, %18 : vector<1x128xf32>
    %20 = vector.broadcast %19 : vector<1x128xf32> to vector<8x128xf32>
    %21 = arith.subf %15, %20 : vector<8x128xf32>
    %22 = arith.mulf %21, %21 : vector<8x128xf32>
    %cst_6 = arith.constant dense<0.000000e+00> : vector<128xf32>
    %23 = vector.multi_reduction <add>, %22, %cst_6 [0] : vector<8x128xf32> to vector<128xf32>
    %24 = vector.shape_cast %23 : vector<128xf32> to vector<1x128xf32>
    %cst_7 = arith.constant 8.000000e+00 : f32
    %25 = vector.broadcast %cst_7 : f32 to vector<1x128xf32>
    %26 = arith.divf %24, %25 : vector<1x128xf32>
    %c0_8 = arith.constant 0 : index
    %c0_9 = arith.constant 0 : index
    %27 = vector.load %arg3[%c0_8, %c0_9] : memref<1x128xf32, #tpu.memory_space<vmem>>, vector<1x128xf32>
    %cst_10 = arith.constant 9.99999974E-6 : f32
    %28 = vector.broadcast %cst_10 : f32 to vector<1x128xf32>
    %29 = arith.addf %26, %28 : vector<1x128xf32>
    %30 = math.rsqrt %29 : vector<1x128xf32>
    %31 = arith.mulf %27, %30 : vector<1x128xf32>
    %32 = vector.broadcast %31 : vector<1x128xf32> to vector<8x128xf32>
    %33 = arith.mulf %21, %32 : vector<8x128xf32>
    %c0_11 = arith.constant 0 : index
    %c0_12 = arith.constant 0 : index
    %34 = vector.load %arg4[%c0_11, %c0_12] : memref<1x128xf32, #tpu.memory_space<vmem>>, vector<1x128xf32>
    %35 = vector.broadcast %34 : vector<1x128xf32> to vector<8x128xf32>
    %36 = arith.addf %33, %35 : vector<8x128xf32>
    %cst_13 = arith.constant 0.000000e+00 : f32
    %37 = vector.broadcast %cst_13 : f32 to vector<8x128xf32>
    %38 = arith.maximumf %36, %37 : vector<8x128xf32>
    %c0_14 = arith.constant 0 : index
    %c0_15 = arith.constant 0 : index
    %39 = vector.load %arg5[%c0_14, %c0_15] : memref<8x128xf32, #tpu.memory_space<vmem>>, vector<8x128xf32>
    tpu.vector_store %arg5[%c0_14, %c0_15], %38 {strides = array<i32>} : memref<8x128xf32, #tpu.memory_space<vmem>>, vector<8x128xf32>,
    return
  }
}

</mosaic_0001>

<bundles_post_ra>
// kernel: tpu_custom_call.1
= control target key start
LH: loop header
LB: loop body
LE: loop exit
PB: predicated region body
PF: predicated region fallthrough
CT: control target
= control target key end

     0   :  { %v134_v1 = vmov 0   ;;  %s185_s0 = inlined_call_operand.vmem [shape: f32[8,2], index: 0, kind: input, shape index: {}]   ;;  %s186_s1 = inlined_call_operand.vmem [shape: f32[2,128], index: 1, kind: input, shape index: {}]   ;;  %s187_s2 = inlined_call_operand.vmem [shape: f32[1,128], index: 2, kind: input, shape index: {}]   ;;  %s188_s3 = inlined_call_operand.vmem [shape: f32[1,128], index: 3, kind: input, shape index: {}]   ;;  %s189_s4 = inlined_call_operand.vmem [shape: f32[1,128], index: 4, kind: input, shape index: {}]   ;;  %s190_s5 = inlined_call_operand.hbm [shape: f32[8,128], index: 5, kind: output, shape index: {}]  }
   0x1   :  { %v21_v0 = vld [vmem:[%s185_s0] sm:$0xff]  ;;  %108 = vset.pattern.permute.xlu0 %v134_v1 }
   0x2   :  { %10 = vsyncpa [#allocation3], 0  ;;  %25 = vperm.xlu0 %108, %v21_v0   ;;  %v135_v2 = vmov 1   ;;  %v28_v3 = vlaneseq  ;;  %v22_v7 = vld [vmem:[%s186_s1] sm:$0x3]  ;;  %s136_s25 = smov [#allocation2]  }
   0x3   :  { %v103_v14 = vld [vmem:[%s187_s2] ss:$0 sm:$0xff]  ;;  %s95_s26 = sshll.u32 %s136_s25, 4  ;;  %s96_s26 = int_to_ptr.vmem [resolvable:$true] %s95_s26 }
   0x4   :  { %v29_v4 = vshrl.u32 %v28_v3, 7  ;;  %v68_v34 = vld [vmem:[%s188_s3] sm:$0x1]  ;;  %s112_s27 = scalar_lea.vmem %s96_s26, 128  ;;  %p117_p1 = scmp.lt.s32.totalorder %s96_s26, %s96_s26 }
   0x5   :  { %v104_v38 = vld [vmem:[%s189_s4] ss:$0 sm:$0xff]  ;;  %p113_p0 = scmp.ne.s32.totalorder %s96_s26, %s112_s27  ;;  %p118_p2 = scmp.lt.s32.totalorder %s112_s27, %s112_s27 }
   0x6   :  { %109 = vset.pattern.permute.xlu0 %v135_v2  ;;  %v30_v5 = vsub.s32 0, %v29_v4  ;;  %v39_v6 = vsub.s32 1, %v29_v4 }
   0x7   :  { %34 = vperm.xlu0 %109, %v21_v0   ;;  %p119_p3 = por %p118_p2, %p117_p1 }
   0x8   :  { %v31_v9 = vrot.slane %v22_v7, %v30_v5  ;;  %v40_v10 = vrot.slane %v22_v7, %v39_v6 }
   0x9   :  { %p120_p4 = pnand %p119_p3, %p113_p0 }
  0x7d   :  { %v26_v8 = vpop.permute.xlu0 %25 }
  0x7e   :  { %v32_v12 = vmul.f32 %v31_v9, %v26_v8 }
  0x82   :  { %v35_v11 = vpop.permute.xlu0 %34 }
  0x83   :  { %v41_v13 = vmul.f32 %v40_v10, %v35_v11 }
  0x85   :  { %v42_v15 = vadd.f32 %v41_v13, %v32_v12 }
  0x87   :  { %v50_v16 = vadd.f32 %v103_v14, %v42_v15 }
  0x89   :  { %v51_v17 = vrot.slane %v50_v16, 4 }
  0x8b   :  { %v52_v18 = vadd.f32 %v51_v17, %v50_v16 }
  0x8d   :  { %v53_v19 = vrot.slane %v52_v18, 2 }
  0x8f   :  { %v54_v20 = vadd.f32 %v53_v19, %v52_v18 }
  0x91   :  { %v55_v21 = vrot.slane %v54_v20, 1 }
  0x93   :  { %v56_v22 = vadd.f32 %v55_v21, %v54_v20 }
  0x95   :  { %v58_v23 = vmul.f32 0.125, %v56_v22 }
  0x97   :  { %v59_v24 = vsub.f32 %v50_v16, %v58_v23 }
  0x99   :  { %v60_v25 = vmul.f32 %v59_v24, %v59_v24 }
  0x9b   :  { %v61_v26 = vrot.slane %v60_v25, 4 }
  0x9d   :  { %v62_v27 = vadd.f32 %v61_v26, %v60_v25 }
  0x9f   :  { %v63_v28 = vrot.slane %v62_v27, 2 }
  0xa1   :  { %v64_v29 = vadd.f32 %v63_v28, %v62_v27 }
  0xa3   :  { %v65_v30 = vrot.slane %v64_v29, 1 }
  0xa5   :  { %v66_v31 = vadd.f32 %v65_v30, %v64_v29 }
  0xa7   :  { %v67_v32 = vmul.f32 0.125, %v66_v31 }
  0xa9   :  { %v69_v33 = vadd.f32 1e-05, %v67_v32 }
  0xab   :  { %110 = vrsqrt.f32 %v69_v33 }
  0xb8   :  { %v111_v35 = vpop.eup %110 }
  0xb9   :  { %v71_v36 = vmul.f32 %v111_v35, %v68_v34 }
  0xbb   :  { %v76_v37 = vrot.slane %v71_v36, %v30_v5 }
  0xbd   :  { %v78_v39 = vmul.f32 %v76_v37, %v59_v24 }
  0xbf   :  { %v86_v40 = vadd.f32 %v104_v38, %v78_v39 }
  0xc1   :  { %v87_v41 = vmax.f32 %v86_v40, 0.0 }
  0xc3   :  { %88 = vst [vmem:[#allocation2] sm:$0xff] %v87_v41 }
  0xc4   :  { %123 = shalt.err (!%p120_p4)
}
  0xc5   :  { %98 = dma.vmem_to_hbm [thread:$0]  %s96_s26, 128, %s190_s5, [#allocation3]  }
  0xc6   :  { %132 = dma.done.wait [#allocation3], 128  }
  0xc7   :  { %133 = vsyncadd [#allocation3], 4294967168 }
  0xc8   :  { %102 = vsyncpa [#allocation3], 1 }

</bundles_post_ra>
